<compile_context>
chip_gen: v5e
topology: v5e:2x2
jax: 0.10.0
libtpu: 0.0.40
codegen_flags: <defaults>
</compile_context>

<pallas_src>
import functools

import numpy as np

import jax
import jax.numpy as jnp
from jax.experimental import pallas as pl
from jax.experimental.pallas import tpu as pltpu


# ---------------------------------------------------------------------------
# Kernel
# ---------------------------------------------------------------------------
def _made_kernel(x_ref, *refs):
    """Fused masked-MLP forward for one batch tile.

    refs = (w1, b1, w2, b2, ..., wL, bL, y_out)
    Weights are stored (in, out) with the autoregressive mask already applied,
    biases are (1, out).
    """
    y_ref = refs[-1]
    wb_refs = refs[:-1]
    n_layers = len(wb_refs) // 2

    h = x_ref[...].astype(jnp.float32)          # (TB, nin)
    for l in range(n_layers):
        w = wb_refs[2 * l][...]                  # (d_in, d_out)
        b = wb_refs[2 * l + 1][...]              # (1, d_out)
        h = jnp.dot(h, w, preferred_element_type=jnp.float32) + b
        if l < n_layers - 1:
            h = jnp.maximum(h, 0.0)              # ReLU between hidden layers
    y_ref[...] = h.astype(y_ref.dtype)


# ---------------------------------------------------------------------------
# Wrapper
# ---------------------------------------------------------------------------
def made_forward(x, weights, biases, *, block_b=256):
    """MADE forward: x (B, nin) -> y (B, nout).

    weights: tuple of masked weights, each (d_in, d_out)
    biases:  tuple of biases, each (1, d_out)
    """
    B, nin = x.shape
    nout = weights[-1].shape[1]

    # Pick a batch tile: biggest requested tile that is sublane-legal (mult of
    # 8) and divides B; otherwise fall back to a single full-batch block.
    tb = min(block_b, B)
    if tb != B and (tb % 8 != 0 or B % tb != 0):
        tb = B
    grid = (pl.cdiv(B, tb),)

    def const_spec(a):
        zeros = (0,) * a.ndim
        return pl.BlockSpec(a.shape, lambda i, _z=zeros: _z)

    in_specs = [pl.BlockSpec((tb, nin), lambda i: (i, 0))]
    flat_params = []
    for w, b in zip(weights, biases):
        flat_params.extend([w, b])
        in_specs.extend([const_spec(w), const_spec(b)])

    out_spec = pl.BlockSpec((tb, nout), lambda i: (i, 0))

    flops = sum(2 * B * w.shape[0] * w.shape[1] for w in weights)
    bytes_accessed = (
        x.size * x.dtype.itemsize
        + sum(w.size * w.dtype.itemsize + b.size * b.dtype.itemsize
              for w, b in zip(weights, biases))
        + B * nout * x.dtype.itemsize
    )
    cost = pl.CostEstimate(
        flops=flops, transcendentals=0, bytes_accessed=bytes_accessed
    )

    y = pl.pallas_call(
        _made_kernel,
        out_shape=jax.ShapeDtypeStruct((B, nout), x.dtype),
        grid=grid,
        in_specs=in_specs,
        out_specs=out_spec,
        compiler_params=pltpu.CompilerParams(
            dimension_semantics=("parallel",),
        ),
        cost_estimate=cost,
    )(x, *flat_params)
    return y


# ---------------------------------------------------------------------------
# MADE mask construction (mirrors MADE.update_masks, host-side, constant)
# ---------------------------------------------------------------------------
def build_made_masks(nin, hidden_sizes, nout, *, seed=0, natural_ordering=False):
    L = len(hidden_sizes)
    rng = np.random.RandomState(seed)
    m = {}
    m[-1] = np.arange(nin) if natural_ordering else rng.permutation(nin)
    for l in range(L):
        m[l] = rng.randint(m[l - 1].min(), nin - 1, size=hidden_sizes[l])
    masks = [m[l - 1][:, None] <= m[l][None, :] for l in range(L)]
    masks.append(m[L - 1][:, None] < m[-1][None, :])
    if nout > nin:
        k = int(nout / nin)
        masks[-1] = np.concatenate([masks[-1]] * k, axis=1)
    # masks[l] has shape (d_in, d_out) -> matches our (in, out) weight layout
    return [jnp.asarray(mm, dtype=jnp.float32) for mm in masks]


def init_params(key, nin, hidden_sizes, nout, masks):
    """nn.Linear-style init, weights stored (in, out), masks pre-applied."""
    hs = [nin] + list(hidden_sizes) + [nout]
    weights, biases = [], []
    for (din, dout), mask in zip(zip(hs, hs[1:]), masks):
        key, kw, kb = jax.random.split(key, 3)
        scale = 1.0 / np.sqrt(din)
        w = jax.random.uniform(kw, (din, dout), jnp.float32, -scale, scale)
        b = jax.random.uniform(kb, (1, dout), jnp.float32, -scale, scale)
        weights.append(w * mask)   # mask is constant during forward()
        biases.append(b)
    return tuple(weights), tuple(biases)


def reference_forward(x, weights, biases):
    """Pure-JAX reference matching the PyTorch MADE.forward semantics."""
    h = x
    n = len(weights)
    for l, (w, b) in enumerate(zip(weights, biases)):
        h = h @ w + b
        if l < n - 1:
            h = jnp.maximum(h, 0.0)
    return h


# ---------------------------------------------------------------------------
# Self-test
# ---------------------------------------------------------------------------
if __name__ == "__main__":
    nin = 32
    hidden_sizes = [64, 64]
    nout = 64          # 2 * nin  (e.g. mean + std per input dim)
    batch = 16

    key = jax.random.PRNGKey(0)
    kx, kp = jax.random.split(key)
    x = jax.random.normal(kx, (batch, nin), jnp.float32)

    masks = build_made_masks(nin, hidden_sizes, nout, seed=0,
                             natural_ordering=False)
    weights, biases = init_params(kp, nin, hidden_sizes, nout, masks)

    fwd = jax.jit(functools.partial(made_forward, block_b=8))
    y = fwd(x, weights, biases)
    jax.block_until_ready(y)

    y_ref = reference_forward(x, weights, biases)
    assert y.shape == (batch, nout)
    assert jnp.allclose(y, y_ref, atol=1e-4, rtol=1e-4), (
        float(jnp.max(jnp.abs(y - y_ref)))
    )

    print("KERNEL_OK")
</pallas_src>

<mosaic_0001>
module attributes {stable_mosaic.version = 11 : i64} {
  func.func @_made_kernel(%arg0: i32, %arg1: memref<8x32xf32, #tpu.memory_space<vmem>>, %arg2: memref<32x64xf32, #tpu.memory_space<vmem>>, %arg3: memref<1x64xf32, #tpu.memory_space<vmem>>, %arg4: memref<64x64xf32, #tpu.memory_space<vmem>>, %arg5: memref<1x64xf32, #tpu.memory_space<vmem>>, %arg6: memref<64x64xf32, #tpu.memory_space<vmem>>, %arg7: memref<1x64xf32, #tpu.memory_space<vmem>>, %arg8: memref<8x64xf32, #tpu.memory_space<vmem>>) attributes {dimension_semantics = [#tpu.dimension_semantics<parallel>], iteration_bounds = array<i64: 2>, scalar_prefetch = 0 : i64, scratch_operands = 0 : i64, tpu.core_type = #tpu.core_type<tc>, window_params = [{transform_indices = @transform_0, window_bounds = array<i64: 8, 32>}, {pipeline_mode = #tpu.pipeline_mode<synchronous>, transform_indices = @transform_1, window_bounds = array<i64: 32, 64>}, {pipeline_mode = #tpu.pipeline_mode<synchronous>, transform_indices = @transform_2, window_bounds = array<i64: 1, 64>}, {pipeline_mode = #tpu.pipeline_mode<synchronous>, transform_indices = @transform_3, window_bounds = array<i64: 64, 64>}, {pipeline_mode = #tpu.pipeline_mode<synchronous>, transform_indices = @transform_4, window_bounds = array<i64: 1, 64>}, {pipeline_mode = #tpu.pipeline_mode<synchronous>, transform_indices = @transform_5, window_bounds = array<i64: 64, 64>}, {pipeline_mode = #tpu.pipeline_mode<synchronous>, transform_indices = @transform_6, window_bounds = array<i64: 1, 64>}, {transform_indices = @transform_7, window_bounds = array<i64: 8, 64>}]} {
    %c0 = arith.constant 0 : index
    %c0_0 = arith.constant 0 : index
    %0 = vector.load %arg1[%c0, %c0_0] : memref<8x32xf32, #tpu.memory_space<vmem>>, vector<8x32xf32>
    %c0_1 = arith.constant 0 : index
    %c0_2 = arith.constant 0 : index
    %1 = vector.load %arg2[%c0_1, %c0_2] : memref<32x64xf32, #tpu.memory_space<vmem>>, vector<32x64xf32>
    %c0_3 = arith.constant 0 : index
    %c0_4 = arith.constant 0 : index
    %2 = vector.load %arg3[%c0_3, %c0_4] : memref<1x64xf32, #tpu.memory_space<vmem>>, vector<1x64xf32>
    %cst = arith.constant dense<0.000000e+00> : vector<8x64xf32>
    %3 = tpu.matmul %0, %1, %cst {dimension_numbers = #tpu.dot_dimension_numbers<[1], [0], [0], [1], [0, 0, 1, 1], [], []>} : vector<8x32xf32>, vector<32x64xf32>, vector<8x64xf32> -> vector<8x64xf32>
    %4 = vector.broadcast %2 : vector<1x64xf32> to vector<8x64xf32>
    %5 = arith.addf %3, %4 : vector<8x64xf32>
    %cst_5 = arith.constant 0.000000e+00 : f32
    %6 = vector.broadcast %cst_5 : f32 to vector<8x64xf32>
    %7 = arith.maximumf %5, %6 : vector<8x64xf32>
    %c0_6 = arith.constant 0 : index
    %c0_7 = arith.constant 0 : index
    %8 = vector.load %arg4[%c0_6, %c0_7] : memref<64x64xf32, #tpu.memory_space<vmem>>, vector<64x64xf32>
    %c0_8 = arith.constant 0 : index
    %c0_9 = arith.constant 0 : index
    %9 = vector.load %arg5[%c0_8, %c0_9] : memref<1x64xf32, #tpu.memory_space<vmem>>, vector<1x64xf32>
    %cst_10 = arith.constant dense<0.000000e+00> : vector<8x64xf32>
    %10 = tpu.matmul %7, %8, %cst_10 {dimension_numbers = #tpu.dot_dimension_numbers<[1], [0], [0], [1], [0, 0, 1, 1], [], []>} : vector<8x64xf32>, vector<64x64xf32>, vector<8x64xf32> -> vector<8x64xf32>
    %11 = vector.broadcast %9 : vector<1x64xf32> to vector<8x64xf32>
    %12 = arith.addf %10, %11 : vector<8x64xf32>
    %cst_11 = arith.constant 0.000000e+00 : f32
    %13 = vector.broadcast %cst_11 : f32 to vector<8x64xf32>
    %14 = arith.maximumf %12, %13 : vector<8x64xf32>
    %c0_12 = arith.constant 0 : index
    %c0_13 = arith.constant 0 : index
    %15 = vector.load %arg6[%c0_12, %c0_13] : memref<64x64xf32, #tpu.memory_space<vmem>>, vector<64x64xf32>
    %c0_14 = arith.constant 0 : index
    %c0_15 = arith.constant 0 : index
    %16 = vector.load %arg7[%c0_14, %c0_15] : memref<1x64xf32, #tpu.memory_space<vmem>>, vector<1x64xf32>
    %cst_16 = arith.constant dense<0.000000e+00> : vector<8x64xf32>
    %17 = tpu.matmul %14, %15, %cst_16 {dimension_numbers = #tpu.dot_dimension_numbers<[1], [0], [0], [1], [0, 0, 1, 1], [], []>} : vector<8x64xf32>, vector<64x64xf32>, vector<8x64xf32> -> vector<8x64xf32>
    %18 = vector.broadcast %16 : vector<1x64xf32> to vector<8x64xf32>
    %19 = arith.addf %17, %18 : vector<8x64xf32>
    %c0_17 = arith.constant 0 : index
    %c0_18 = arith.constant 0 : index
    %20 = vector.load %arg8[%c0_17, %c0_18] : memref<8x64xf32, #tpu.memory_space<vmem>>, vector<8x64xf32>
    tpu.vector_store %arg8[%c0_17, %c0_18], %19 {strides = array<i32>} : memref<8x64xf32, #tpu.memory_space<vmem>>, vector<8x64xf32>,
    return
  }
  func.func @transform_0(%arg0: i32) -> (i32, i32) {
    %c0_i32 = arith.constant 0 : i32
    %c0_i32_0 = arith.constant 0 : i32
    return %arg0, %c0_i32 : i32, i32
  }
  func.func @transform_1(%arg0: i32) -> (i32, i32) {
    %c0_i32 = arith.constant 0 : i32
    %c0_i32_0 = arith.constant 0 : i32
    %c0_i32_1 = arith.constant 0 : i32
    return %c0_i32, %c0_i32_0 : i32, i32
  }
  func.func @transform_2(%arg0: i32) -> (i32, i32) {
    %c0_i32 = arith.constant 0 : i32
    %c0_i32_0 = arith.constant 0 : i32
    %c0_i32_1 = arith.constant 0 : i32
    return %c0_i32, %c0_i32_0 : i32, i32
  }
  func.func @transform_3(%arg0: i32) -> (i32, i32) {
    %c0_i32 = arith.constant 0 : i32
    %c0_i32_0 = arith.constant 0 : i32
    %c0_i32_1 = arith.constant 0 : i32
    return %c0_i32, %c0_i32_0 : i32, i32
  }
  func.func @transform_4(%arg0: i32) -> (i32, i32) {
    %c0_i32 = arith.constant 0 : i32
    %c0_i32_0 = arith.constant 0 : i32
    %c0_i32_1 = arith.constant 0 : i32
    return %c0_i32, %c0_i32_0 : i32, i32
  }
  func.func @transform_5(%arg0: i32) -> (i32, i32) {
    %c0_i32 = arith.constant 0 : i32
    %c0_i32_0 = arith.constant 0 : i32
    %c0_i32_1 = arith.constant 0 : i32
    return %c0_i32, %c0_i32_0 : i32, i32
  }
  func.func @transform_6(%arg0: i32) -> (i32, i32) {
    %c0_i32 = arith.constant 0 : i32
    %c0_i32_0 = arith.constant 0 : i32
    %c0_i32_1 = arith.constant 0 : i32
    return %c0_i32, %c0_i32_0 : i32, i32
  }
  func.func @transform_7(%arg0: i32) -> (i32, i32) {
    %c0_i32 = arith.constant 0 : i32
    %c0_i32_0 = arith.constant 0 : i32
    return %arg0, %c0_i32 : i32, i32
  }
}

</mosaic_0001>

<bundles_post_ra>
// kernel: made_forward.1
= control target key start
LH: loop header
LB: loop body
LE: loop exit
PB: predicated region body
PF: predicated region fallthrough
CT: control target
= control target key end

     0   :  { %s1084_s0 = inlined_call_operand.hbm [shape: f32[16,32], index: 0, kind: input, shape index: {}]   ;;  %s1085_s1 = inlined_call_operand.hbm [shape: f32[32,64], index: 1, kind: input, shape index: {}]   ;;  %s1086_s2 = inlined_call_operand.vmem [shape: f32[1,64], index: 2, kind: input, shape index: {}]   ;;  %s1087_s3 = inlined_call_operand.hbm [shape: f32[64,64], index: 3, kind: input, shape index: {}]   ;;  %s1088_s4 = inlined_call_operand.vmem [shape: f32[1,64], index: 4, kind: input, shape index: {}]   ;;  %s1089_s5 = inlined_call_operand.hbm [shape: f32[64,64], index: 5, kind: input, shape index: {}]   ;;  %s1090_s6 = inlined_call_operand.vmem [shape: f32[1,64], index: 6, kind: input, shape index: {}]   ;;  %s1091_s7 = inlined_call_operand.hbm [shape: f32[16,64], index: 7, kind: output, shape index: {}]  }
   0x1   :  { %1092 = sst [smem:[#allocation15_spill]] %s1085_s1 }
   0x2   :  { %12 = vsyncpa [#allocation3], 0 }
   0x3   :  { %14 = vsyncpa [#allocation3 + $0x1], 0 }
   0x4   :  { %15 = vsyncpa [#allocation6], 0 }
   0x5   :  { %16 = vsyncpa [#allocation9], 0 }
   0x6   :  { %17 = vsyncpa [#allocation4], 0 }
   0x7   :  { %19 = vsyncpa [#allocation4 + $0x1], 0  ;;  %s912_s24 = smov 0   ;;  %s914_s25 = smov 0  }
   0x8   :  { %s916_s26 = smov 0   ;;  %s918_s27 = smov 0  }
   0x9 LB: > { %s1093_s1 = sld [smem:[#allocation15_spill]]  ;;  %s936_s8 = sadd.s32 4294967295, %s865_s27   ;;  %s865_s27 = sphi %s918_s27, %s1104_s27   ;;  %s861_s26 = sphi %s916_s26, %s1103_s26   ;;  %s857_s25 = sphi %s914_s25, %s1102_s25   ;;  %s853_s24 = sphi %s912_s24, %s1101_s24  }
   0xa   : > { %p569_p0 = scmp.ge.s32.totalorder %s865_s27, 1  ;;  %p46_p1 = scmp.eq.s32.totalorder %s936_s8, 0 }
   0xb   : > { %p208_p2 = scmp.lt.s32.totalorder %s865_s27, 3  ;;  %s867_s10 = smov [#allocation5]  }
   0xc   : > { %s221_s11 = sshll.u32 %s867_s10, 4  ;;  %s236_s14 = sshll.u32 %s1087_s3, 4  ;;  %s222_s11 = int_to_ptr.vmem [resolvable:$true] %s221_s11  ;;  %s237_s14 = int_to_ptr.hbm [resolvable:$true] %s236_s14 }
   0xd   : > { %p941_p3 = pnand %p569_p0, %p208_p2  ;;  %s253_s18 = sshll.u32 %s1089_s5, 4  ;;  %s254_s18 = int_to_ptr.hbm [resolvable:$true] %s253_s18 }
   0xe   : > { %s868_s19 = smov [#allocation7]   ;;  %s869_s21 = smov 128  }
   0xf   : > { %s219_s30 = sshll.u32 %s1093_s1, 4  ;;  %p605_p4 = pneg %p941_p3  ;;  %s220_s30 = int_to_ptr.hbm [resolvable:$true] %s219_s30 }
  0x10   : > { %s238_s20 = sshll.u32 %s868_s19, 4  ;;  %s870_s22 = smov 8   ;;  %s239_s20 = int_to_ptr.vmem [resolvable:$true] %s238_s20 }
  0x11   : > { %p953_p6 = pnand %p605_p4, %p46_p1  ;;  %s871_s23 = smov [#allocation8]  }
  0x12   : > { %s255_s28 = sshll.u32 %s871_s23, 4  ;;  %s568_s29 = sadd.s32 4294967294, %s865_s27   ;;  %s256_s28 = int_to_ptr.vmem [resolvable:$true] %s255_s28 }
  0x13   : > { %608 = dma.hbm_to_vmem [thread:$0]  (!%p953_p6), %s220_s30, 512, %s222_s11, [#allocation6], %s869_s21, %s869_s21, %s870_s22  }
  0x14   : > { %611 = dma.hbm_to_vmem [thread:$0]  (!%p953_p6), %s237_s14, 1024, %s239_s20, [#allocation6], %s869_s21, %s869_s21, %s870_s22  }
  0x15   : > { %614 = dma.hbm_to_vmem [thread:$0]  (!%p953_p6), %s254_s18, 1024, %s256_s28, [#allocation9], %s869_s21, %s869_s21, %s870_s22  }
  0x16   : > { %s968_s10 = sadd.s32 1, %s865_s27   ;;  %s32_s12 = sadd.s32 1, %s861_s26 }
  0x17   : > { %s29_s30 = ssub.s32 %s865_s27, %s968_s10  ;;  %p39_p7 = scmp.ne.s32.totalorder %s861_s26, %s857_s25 }
  0x18   : > { %p30_p8 = scmp.eq.s32.totalorder %s29_s30, 0  ;;  %p40_p9 = scmp.eq.s32.totalorder %s865_s27, 0 }
  0x19   : > { %p45_p10 = scmp.ne.s32.totalorder %s857_s25, %s853_s24  ;;  %p195_p11 = scmp.eq.s32.totalorder %s936_s8, 1 }
  0x1a   : > { %s980_s11 = scalar_select %p30_p8, %s861_s26, %s32_s12  }
  0x1b   : > { %p984_p12 = por %p46_p1, %p45_p10  ;;  %p988_p13 = por %p195_p11, %p39_p7 }
  0x1c   : > { %p201_p0 = scmp.eq.s32.totalorder %s568_s29, 1  ;;  %p41_p2 = por %p40_p9, %p39_p7 }
  0x1d   : > { %s272_s15 = sand.u32 1, %s861_s26   ;;  %p626_p6 = scmp.lt.s32.totalorder %s865_s27, 2 }
  0x1e   : > { %p993_p4 = por %p201_p0, %p45_p10  ;;  %s574_s17 = sshll.u32 %s272_s15, 3 }
  0x1f   : > { %s575_s18 = sshll.u32 %s865_s27, 3  ;;  %s276_s23 = scalar_lea.vmem [#allocation2], %s574_s17 }
  0x20   : > { %s280_s21 = scalar_lea.hbm %s1084_s0, %s575_s18  ;;  %s284_s28 = sshll.u32 %s276_s23, 4  ;;  %s285_s28 = int_to_ptr.vmem [resolvable:$true] %s284_s28 }
  0x21   : > { %s282_s22 = sshll.u32 %s280_s21, 4  ;;  %p1002_p8 = pnand %p626_p6, %p41_p2  ;;  %s283_s22 = int_to_ptr.hbm [resolvable:$true] %s282_s22 }
  0x22   : > { %s273_s12 = scalar_lea.sflag [#allocation3], %s272_s15  ;;  %s761_s30 = sshra.s32 %s283_s22, 4  ;;  %s762_s30 = int_to_ptr.hbm [resolvable:$true] %s761_s30 }
  0x23   : > { %s763_s1 = scalar_lea.hbm %s762_s30, 8  ;;  %p765_p9 = pneg %p1002_p8 }
  0x24   : > { %p764_p7 = scmp.ne.s32.totalorder %s762_s30, %s763_s1  ;;  %s768_s17 = scalar_lea.hbm %s1084_s0, 16 }
  0x25   : > { %p769_p0 = scmp.lt.s32.totalorder %s762_s30, %s1084_s0  ;;  %p770_p2 = scmp.lt.s32.totalorder %s768_s17, %s763_s1 }
  0x26   : > { %p766_p10 = pnand %p765_p9, %p764_p7 }
  0x27   : > { %p771_p6 = por %p770_p2, %p769_p0 }
  0x28   : > { %p767_p11 = pneg %p766_p10 }
  0x2a   : > { %p772_p5 = pnand %p771_p6, %p767_p11 }
  0x2c   : > { %775 = shalt.err (!%p772_p5)
}
  0x2d   : > { %618 = dma.hbm_to_vmem [thread:$0]  (!%p1002_p8), %s283_s22, 128, %s285_s28, %s273_s12  }
  0x2e   : > { %293 = sbr.rel (%p941_p3) target bundleno = 461 (0x1cd), region = 48  ;;  %s1019_s15 = sand.u32 (!%p941_p3), 1, %s857_s25  }
  0x2f   : > { %s577_s23 = sshll.u32 (!%p941_p3), %s1019_s15, 3  ;;  %s296_s18 = scalar_lea.sflag (!%p941_p3), [#allocation3], %s1019_s15 }
  0x30   : > { %s299_s1 = scalar_lea.vmem (!%p941_p3), [#allocation2], %s577_s23 }
  0x33   : > { %836 = dma.done.wait (%p984_p12), %s296_s18, 128  }
  0x34   : > { %838 = vsyncadd (%p984_p12), %s296_s18, 4294967168 }
  0x35   : > { %840 = dma.done.wait (%p46_p1), [#allocation6], 1536  }
  0x36   : > { %842 = vsyncadd (%p46_p1), [#allocation6], 4294965760 }
  0x37   : > { %844 = dma.done.wait (%p46_p1), [#allocation9], 1024  }
  0x38   : > { %846 = vsyncadd (%p46_p1), [#allocation9], 4294966272  ;;  %v350_v0 = vld [vmem:[#allocation5 + $0x18] sm:$0xff]  ;;  %v349_v1 = vld [vmem:[#allocation5 + $0x10] sm:$0xff]  ;;  %vm355_vm0 = vcmask 261120   ;;  %vm392_vm1 = vcmask 523264  }
  0x39   : > { %371 = vmatpush.msra.mxu0 %v350_v0  ;;  %v387_v2 = vld [vmem:[#allocation7 + $0x38] sm:$0xff]  ;;  %v348_v3 = vld [vmem:[#allocation5 + $0x8] sm:$0xff]  ;;  %v386_v4 = vld [vmem:[#allocation7 + $0x30] sm:$0xff]  ;;  %s586_s29 = sshll.u32 %s936_s8, 3  ;;  %s345_s21 = scalar_lea.vmem [#allocation10], %s577_s23 }
  0x3a   : > { %404 = vmatpush.msra.mxu1 %v387_v2  ;;  %v385_v5 = vld [vmem:[#allocation7 + $0x28] sm:$0xff]  ;;  %v347_v6 = vld [vmem:[#allocation5] sm:$0xff]  ;;  %v346_v7 = vld [vmem:[%s299_s1] sm:$0xff]  ;;  %s464_s19 = scalar_lea.hbm %s1091_s7, %s586_s29  ;;  %s466_s18 = sshll.u32 %s345_s21, 4  ;;  %s467_s18 = int_to_ptr.vmem [resolvable:$true] %s466_s18 }
  0x3b   : > { %372 = vmatpush.msra.mxu0 %v349_v1  ;;  %v384_v8 = vld [vmem:[#allocation7 + $0x20] sm:$0xff]  ;;  %v383_v9 = vld [vmem:[#allocation7 + $0x18] sm:$0xff]  ;;  %v382_v10 = vld [vmem:[#allocation7 + $0x10] sm:$0xff]  ;;  %s468_s1 = sshll.u32 %s464_s19, 4  ;;  %s454_s8 = scalar_lea.sflag [#allocation4], %s1019_s15  ;;  %s469_s1 = int_to_ptr.hbm [resolvable:$true] %s468_s1 }
  0x3c   : > { %405 = vmatpush.msra.mxu1 %v386_v4  ;;  %v381_v11 = vld [vmem:[#allocation7 + $0x8] sm:$0xff]  ;;  %v380_v12 = vld [vmem:[#allocation7] sm:$0xff]  ;;  %v424_v13 = vld [vmem:[#allocation8 + $0x38] sm:$0xff]  ;;  %s805_s9 = sshra.s32 %s469_s1, 4  ;;  %s811_s23 = scalar_lea.hbm %s1091_s7, 16  ;;  %s806_s9 = int_to_ptr.hbm [resolvable:$true] %s805_s9 }
  0x3d   : > { %373 = vmatpush.msra.mxu0 %v348_v3  ;;  %v423_v14 = vld [vmem:[#allocation8 + $0x30] sm:$0xff]  ;;  %440 = vmatpush.msra.mxu2 %v424_v13  ;;  %v422_v15 = vld [vmem:[#allocation8 + $0x28] sm:$0xff]  ;;  %v421_v16 = vld [vmem:[#allocation8 + $0x20] sm:$0xff]  ;;  %s807_s13 = scalar_lea.hbm %s806_s9, 8  ;;  %p812_p12 = scmp.lt.s32.totalorder %s806_s9, %s1091_s7 }
  0x3e   : > { %406 = vmatpush.msra.mxu1 %v385_v5  ;;  %v420_v17 = vld [vmem:[#allocation8 + $0x18] sm:$0xff]  ;;  %v668_v18 = vld [vmem:[%s1086_s2] ss:$0 sm:$0xff]  ;;  %v418_v23 = vld [vmem:[#allocation8 + $0x8] sm:$0xff]  ;;  %p808_p1 = scmp.ne.s32.totalorder %s806_s9, %s807_s13  ;;  %p813_p8 = scmp.lt.s32.totalorder %s811_s23, %s807_s13 }
  0x3f   : > { %374 = vmatpush.msra.mxu0 %v347_v6  ;;  %441 = vmatpush.msra.mxu2 %v423_v14  ;;  %v419_v22 = vld [vmem:[#allocation8 + $0x10] sm:$0xff]  ;;  %v417_v24 = vld [vmem:[#allocation8] sm:$0xff] }
  0x40   : > { %582 = vmatmul.msk.f32.vlgmr.msra.gmra.mxu0 %vm355_vm0, %v346_v7  ;;  %407 = vmatpush.msra.mxu1 %v384_v8  ;;  %v669_v25 = vld [vmem:[%s1088_s4] ss:$0 sm:$0xff]  ;;  %p809_p3 = pnand %p808_p1, %p988_p13  ;;  %p814_p7 = por %p813_p8, %p812_p12 }
  0x41   : > { %442 = vmatpush.msra.mxu2 %v422_v15  ;;  %v670_v29 = vld [vmem:[%s1090_s6] ss:$0 sm:$0xff] }
  0x42   : > { %408 = vmatpush.msra.mxu1 %v383_v9  ;;  %p810_p5 = pneg %p809_p3 }
  0x43   : > { %443 = vmatpush.msra.mxu2 %v421_v16 }
  0x44   : > { %409 = vmatpush.msra.mxu1 %v382_v10  ;;  %p815_p9 = pnand %p814_p7, %p810_p5 }
  0x45   : > { %444 = vmatpush.msra.mxu2 %v420_v17 }
  0x46   : > { %410 = vmatpush.msra.mxu1 %v381_v11 }
  0x47   : > { %445 = vmatpush.msra.mxu2 %v419_v22 }
  0x48   : > { %411 = vmatpush.msra.mxu1 %v380_v12 }
  0x49   : > { %446 = vmatpush.msra.mxu2 %v418_v23 }
  0x4b   : > { %447 = vmatpush.msra.mxu2 %v417_v24 }
  0xbd   : > { %v376_v19 = vpop.f32.mrf.mxu0 }
  0xbe   : > { %v377_v20 = vadd.f32 %v668_v18, %v376_v19 }
  0xc0   : > { %v379_v21 = vmax.f32 %v377_v20, 0.0 }
  0xc2   : > { %583 = vmatmul.msk.f32.vlgmr.msra.gmra.mxu1 %vm392_vm1, %v379_v21 }
 0x13f   : > { %v413_v26 = vpop.f32.mrf.mxu1 }
 0x140   : > { %v414_v27 = vadd.f32 %v669_v25, %v413_v26 }
 0x142   : > { %v416_v28 = vmax.f32 %v414_v27, 0.0 }
 0x144   : > { %584 = vmatmul.msk.f32.vlgmr.msra.gmra.mxu2 %vm392_vm1, %v416_v28 }
 0x1c7   : > { %v449_v30 = vpop.f32.mrf.mxu2 }
 0x1c8   : > { %v450_v31 = vadd.f32 %v670_v29, %v449_v30 }
 0x1ca   : > { %452 = vst.msk [vmem:[%s345_s21] sm:$0xff] %vm392_vm1, %v450_v31 }
 0x1cb   : > { %818 = shalt.err (!%p815_p9)
}
 0x1cc   : > { %603 = dma.vmem_to_hbm [thread:$0]  (%p988_p13), %s467_s18, 128, %s469_s1, %s454_s8  }
 0x1cd PF: > { %s480_s15 = sand.u32 1, %s853_s24   ;;  %p1100_p10 = scmp.ge.s32.totalorder %s865_s27, 2 }
 0x1ce   : > { %s481_s30 = scalar_lea.sflag [#allocation4], %s480_s15 }
 0x1cf   : > { %p620_p11 = pnand %p1100_p10, %p993_p4 }
 0x1d1   : > { %p621_p0 = pneg %p620_p11 }
 0x1d3   : > { %848 = dma.done.wait (%p621_p0), %s481_s30, 128  }
 0x1d4   : > { %850 = vsyncadd (%p621_p0), %s481_s30, 4294967168  ;;  %p22_p2 = scmp.ge.s32.totalorder %s968_s10, 4   ;;  %s1101_s24 = smov %s857_s25 }
 0x1d5   : > { %s1102_s25 = smov %s861_s26  ;;  %s1103_s26 = smov %s980_s11 }
 0x1d6   : > { %s1104_s27 = smov %s968_s10  ;;  %24 = sbr.rel (!%p22_p2) target bundleno = 9 (0x9), region = 105 }
 0x1db   :  { %487 = vsyncpa [#allocation3], 1 }
 0x1dc   :  { %489 = vsyncpa [#allocation3 + $0x1], 1 }
 0x1dd   :  { %490 = vsyncpa [#allocation6], 1 }
 0x1de   :  { %491 = vsyncpa [#allocation9], 1 }
 0x1df   :  { %492 = vsyncpa [#allocation4], 1 }
 0x1e0   :  { %494 = vsyncpa [#allocation4 + $0x1], 1 }

</bundles_post_ra>
